<compile_context>
chip_gen: v7x
topology: tpu7x:2x2x1
jax: 0.10.0
libtpu: 0.0.40
codegen_flags: <defaults>
</compile_context>

<pallas_src>
import functools

import jax
import jax.numpy as jnp
from jax.experimental import pallas as pl
from jax.experimental.pallas import tpu as pltpu

EPS = 1e-5        # BatchNorm1d default eps
K = 7             # conv kernel size
PAD = 3           # conv padding ("same")


def _round_up(a, b):
    return (a + b - 1) // b * b


def _cdiv(a, b):
    return -(-a // b)


# --------------------------------------------------------------------------------------
# Pass 1: per-channel batch statistics over (B, L).
# x tile: (C, TILE) f32.  Per-lane partial sums accumulate with plain VPU adds every step;
# the cross-lane reduction, the exact correction for zero-padded tail columns and the
# scale/shift computation happen once in the finalize step.
#   scale = bn_w * rsqrt(var + eps),  shift = bn_b - mean * scale
# --------------------------------------------------------------------------------------
def bn_stats_kernel(x_ref, bnw_ref, bnb_ref, scale_ref, shift_ref,
                    s_sc, ss_sc, c0_sc, *, inv_n, n_zpad):
    b = pl.program_id(0)
    j = pl.program_id(1)

    @pl.when((b == 0) & (j == 0))
    def _init():
        c0_sc[...] = x_ref[:, 0:1].astype(jnp.float32)   # per-channel shift (stability)
        s_sc[...] = jnp.zeros_like(s_sc)
        ss_sc[...] = jnp.zeros_like(ss_sc)

    # Hot loop: loads + a handful of VALU ops, no mask, no cross-lane reduce.
    xc = x_ref[...].astype(jnp.float32) - c0_sc[...]
    s_sc[...] += xc
    ss_sc[...] += xc * xc

    @pl.when((b == pl.num_programs(0) - 1) & (j == pl.num_programs(1) - 1))
    def _finalize():
        c0 = c0_sc[...]
        # Each zero-padded column contributed (-c0) to s and (+c0^2) to ss: correct exactly.
        s = jnp.sum(s_sc[...], axis=1, keepdims=True) + n_zpad * c0
        ss = jnp.sum(ss_sc[...], axis=1, keepdims=True) - n_zpad * (c0 * c0)
        mc = s * inv_n                       # mean of shifted data
        var = ss * inv_n - mc * mc           # biased variance (training-mode BN)
        mean = mc + c0
        scale = jax.lax.rsqrt(var + EPS) * bnw_ref[...]
        scale_ref[...] = scale
        shift_ref[...] = bnb_ref[...] - mean * scale


# --------------------------------------------------------------------------------------
# Pass 2: conditional conv (windows built in-kernel, ONE fused f32 MXU matmul with the bias
# folded in via an all-ones tail row) + batch-norm apply + affine modulation.
#   gb    = W(2*C8, KM_pad) @ slab(KM_pad, TILE)       slab rows: [7 shifted windows | ones]
#   out   = gamma * (x * scale + shift) + beta
# --------------------------------------------------------------------------------------
def cbn_apply_kernel(x_ref, c_ref, w_ref, scale_ref, shift_ref, o_ref,
                     *, C, C8, M_pad, KM_pad, KM_stack, TILE, W_WIN):
    j = pl.program_id(1)
    if TILE % 128 == 0:
        base = pl.multiple_of(j * TILE, 128)         # 128-aligned dynamic lane window
    else:
        base = 0                                     # single-tile case (TILE == L < 128-mult)
    cwin = c_ref[:, pl.ds(base, W_WIN)]              # (M_pad, W_WIN), W_WIN = TILE + halo

    # Build the 7 shifted conv windows with XLU rolls (free slot while memory-bound).
    parts = [cwin[:, :TILE]]
    for k in range(1, K):
        parts.append(pltpu.roll(cwin, shift=W_WIN - k, axis=1)[:, :TILE])
    # All-ones tail rows: W has the conv bias in column KM_stack (zeros beyond), so the ones
    # rows fold the bias add into the matmul at zero extra MXU cost.
    parts.append(jnp.ones((KM_pad - KM_stack, TILE), jnp.float32))
    slab = jnp.concatenate(parts, axis=0)            # (KM_pad, TILE) f32

    gb = jnp.dot(w_ref[...], slab, preferred_element_type=jnp.float32)  # (2*C8, TILE)
    gamma = gb[:C, :]
    beta = gb[C8:C8 + C, :]

    xhat = x_ref[...] * scale_ref[...] + shift_ref[...]
    o_ref[...] = (gamma * xhat + beta).astype(o_ref.dtype)


def _vmem_limit_bytes(C8, M_pad, KM_pad, TILE, LC_total):
    f32 = 4
    est = (2 * 2 * C8 * TILE * f32          # x in + out blocks, double-buffered
           + 2 * M_pad * LC_total * f32     # resident conditioning block
           + 2 * 2 * C8 * KM_pad * f32      # stacked weights
           + 2 * KM_pad * TILE * f32        # in-kernel slab value
           + 2 * 2 * C8 * TILE * f32        # matmul result / temps
           + 2 * C8 * TILE * f32)           # pass-1 per-lane accumulators
    # >= 32 MiB so larger tiles are usable on v5e/v6e, <= 48 MiB to stay inside v7x's 64 MiB.
    return int(min(48 * 1024 * 1024, max(32 * 1024 * 1024, 2 * est)))


def conditional_batch_norm(x, c, gamma_w, gamma_b, beta_w, beta_b, bn_w, bn_b):
    """x: (B, C, L) f32, c: (B, M, Lc) f32, conv weights (C, M, K), biases/BN params (C,)."""
    B, C, L = x.shape
    _, M, Lc = c.shape
    assert Lc <= L

    # ---- tiling decisions (native (B, C, L) layout; C -> sublanes, L -> lanes) -------
    C8 = _round_up(C, 8)
    M_pad = _round_up(M, 8)
    KM_stack = K * M_pad                       # rows of the in-kernel window stack
    KM_pad = _round_up(KM_stack + 1, 8)        # + ones row for the folded bias

    budget = 2 * 1024 * 1024                   # ~2 MiB per x block -> near the HBM roofline
    tile_target = min(2048, max(512, _round_up(budget // (4 * max(C, 1)), 128)))
    if L <= tile_target:
        TILE, L_pad, num_tiles = L, L, 1       # full-L block; no padding, no relayout of x
    else:
        num_tiles = _cdiv(L, tile_target)
        TILE = _round_up(_cdiv(L, num_tiles), 128)
        L_pad = num_tiles * TILE

    x_in = x if L_pad == L else jnp.pad(x, ((0, 0), (0, 0), (0, L_pad - L)))

    # ---- tiny conditioning array with conv halo (resident per batch element) ---------
    W_WIN = _round_up(TILE + 2 * PAD, 128)
    LC_total = (num_tiles - 1) * TILE + W_WIN
    carr = jnp.zeros((B, M_pad, LC_total), jnp.float32)
    carr = carr.at[:, :M, PAD:PAD + Lc].set(c.astype(jnp.float32))

    # ---- stacked conv weights: gamma rows [0,C), beta rows [C8,C8+C); col = k*M_pad+m;
    #      col KM_stack holds the bias (matched by the all-ones slab rows in the kernel) ----
    wg = jnp.transpose(gamma_w, (0, 2, 1)).astype(jnp.float32)           # (C, K, M)
    wb = jnp.transpose(beta_w, (0, 2, 1)).astype(jnp.float32)
    Wg = jnp.zeros((C, K, M_pad), jnp.float32).at[:, :, :M].set(wg).reshape(C, KM_stack)
    Wb = jnp.zeros((C, K, M_pad), jnp.float32).at[:, :, :M].set(wb).reshape(C, KM_stack)
    W = jnp.zeros((2 * C8, KM_pad), jnp.float32)
    W = W.at[:C, :KM_stack].set(Wg).at[C8:C8 + C, :KM_stack].set(Wb)
    W = W.at[:C, KM_stack].set(gamma_b.astype(jnp.float32))
    W = W.at[C8:C8 + C, KM_stack].set(beta_b.astype(jnp.float32))

    bnw = bn_w.reshape(C, 1).astype(jnp.float32)
    bnb = bn_b.reshape(C, 1).astype(jnp.float32)

    vmem_limit = _vmem_limit_bytes(C8, M_pad, KM_pad, TILE, LC_total)

    x_spec = pl.BlockSpec((None, C, TILE), lambda b, j: (b, 0, j))
    vec_spec = pl.BlockSpec((C, 1), lambda b, j: (0, 0))

    # ---- pass 1: batch-norm statistics (sequential accumulator grid) -----------------
    scale, shift = pl.pallas_call(
        functools.partial(bn_stats_kernel,
                          inv_n=1.0 / float(B * L),
                          n_zpad=float(B * (L_pad - L))),
        out_shape=(jax.ShapeDtypeStruct((C, 1), jnp.float32),
                   jax.ShapeDtypeStruct((C, 1), jnp.float32)),
        grid_spec=pltpu.PrefetchScalarGridSpec(
            num_scalar_prefetch=0,
            grid=(B, num_tiles),
            in_specs=[x_spec, vec_spec, vec_spec],
            out_specs=[vec_spec, vec_spec],
            scratch_shapes=[pltpu.VMEM((C, TILE), jnp.float32),   # per-lane partial sum
                            pltpu.VMEM((C, TILE), jnp.float32),   # per-lane partial sumsq
                            pltpu.VMEM((C, 1), jnp.float32)]),    # c0 shift
        compiler_params=pltpu.CompilerParams(
            dimension_semantics=("arbitrary", "arbitrary"),
            vmem_limit_bytes=vmem_limit),
    )(x_in, bnw, bnb)

    # ---- pass 2: fused conv (in-kernel windows) + normalize + modulate ---------------
    out_pad = pl.pallas_call(
        functools.partial(cbn_apply_kernel, C=C, C8=C8, M_pad=M_pad, KM_pad=KM_pad,
                          KM_stack=KM_stack, TILE=TILE, W_WIN=W_WIN),
        out_shape=jax.ShapeDtypeStruct((B, C, L_pad), x.dtype),
        grid_spec=pltpu.PrefetchScalarGridSpec(
            num_scalar_prefetch=0,
            grid=(B, num_tiles),
            in_specs=[x_spec,                                                   # x tile
                      pl.BlockSpec((None, M_pad, LC_total), lambda b, j: (b, 0, 0)),  # cond
                      pl.BlockSpec((2 * C8, KM_pad), lambda b, j: (0, 0)),      # weights
                      vec_spec, vec_spec],                                      # scale, shift
            out_specs=x_spec),
        compiler_params=pltpu.CompilerParams(
            dimension_semantics=("parallel", "parallel"),
            vmem_limit_bytes=vmem_limit),
    )(x_in, carr, W, scale, shift)

    return out_pad if L_pad == L else out_pad[:, :, :L]


def reference(x, c, gamma_w, gamma_b, beta_w, beta_b, bn_w, bn_b):
    """Pure-JAX reference matching the PyTorch forward (training-mode BatchNorm1d)."""
    B, C, L = x.shape
    mean = jnp.mean(x, axis=(0, 2), keepdims=True)
    var = jnp.mean((x - mean) ** 2, axis=(0, 2), keepdims=True)
    xhat = (x - mean) / jnp.sqrt(var + EPS)
    xhat = xhat * bn_w.reshape(1, C, 1) + bn_b.reshape(1, C, 1)

    pc = jnp.pad(c, ((0, 0), (0, 0), (0, L - c.shape[-1])))
    dn = ('NCH', 'OIH', 'NCH')
    gamma = jax.lax.conv_general_dilated(pc, gamma_w, (1,), [(PAD, PAD)],
                                         dimension_numbers=dn) + gamma_b.reshape(1, C, 1)
    beta = jax.lax.conv_general_dilated(pc, beta_w, (1,), [(PAD, PAD)],
                                        dimension_numbers=dn) + beta_b.reshape(1, C, 1)
    return gamma * xhat + beta


if __name__ == "__main__":
    B, C, M, L, Lc = 2, 4, 8, 16, 8   # batch, channels, n_moras, length, cond length

    key = jax.random.PRNGKey(0)
    kx, kc, kgw, kbw, kgb, kbb, kbw2, kbb2 = jax.random.split(key, 8)

    # Non-zero mean to exercise the shifted-sum variance path.
    x = jax.random.normal(kx, (B, C, L), jnp.float32) + 3.0
    c = jax.random.normal(kc, (B, M, Lc), jnp.float32)

    # Conv1d(M -> C, kernel=7): weight ~ N(0, 0.01) from init_weights; bias ~ U(-b, b) default.
    gamma_w = 0.01 * jax.random.normal(kgw, (C, M, K), jnp.float32)
    beta_w = 0.01 * jax.random.normal(kbw, (C, M, K), jnp.float32)
    bound = 1.0 / jnp.sqrt(M * K)
    gamma_b = jax.random.uniform(kgb, (C,), jnp.float32, -bound, bound)
    beta_b = jax.random.uniform(kbb, (C,), jnp.float32, -bound, bound)

    # BatchNorm1d affine params (perturbed from defaults to make the check meaningful).
    bn_w = 1.0 + 0.1 * jax.random.normal(kbw2, (C,), jnp.float32)
    bn_b = 0.1 * jax.random.normal(kbb2, (C,), jnp.float32)

    out = conditional_batch_norm(x, c, gamma_w, gamma_b, beta_w, beta_b, bn_w, bn_b)
    out = jax.block_until_ready(out)

    ref = reference(x, c, gamma_w, gamma_b, beta_w, beta_b, bn_w, bn_b)
    assert out.shape == (B, C, L)
    assert jnp.allclose(out, ref, atol=2e-3, rtol=2e-3), "mismatch vs JAX reference"

    print("KERNEL_OK")
</pallas_src>

<mosaic_0001>
module attributes {stable_mosaic.version = 11 : i64} {
  func.func @bn_stats_kernel(%arg0: i32, %arg1: i32, %arg2: memref<1x4x16xf32, #tpu.memory_space<vmem>>, %arg3: memref<4x1xf32, #tpu.memory_space<vmem>>, %arg4: memref<4x1xf32, #tpu.memory_space<vmem>>, %arg5: memref<4x1xf32, #tpu.memory_space<vmem>>, %arg6: memref<4x1xf32, #tpu.memory_space<vmem>>, %arg7: memref<4x16xf32, #tpu.memory_space<vmem>>, %arg8: memref<4x16xf32, #tpu.memory_space<vmem>>, %arg9: memref<4x1xf32, #tpu.memory_space<vmem>>) attributes {dimension_semantics = [#tpu.dimension_semantics<arbitrary>, #tpu.dimension_semantics<arbitrary>], iteration_bounds = array<i64: 2, 1>, scalar_prefetch = 0 : i64, scratch_operands = 3 : i64, tpu.core_type = #tpu.core_type<tc>, window_params = [{transform_indices = @transform_0, window_bounds = array<i64: 1, 4, 16>}, {pipeline_mode = #tpu.pipeline_mode<synchronous>, transform_indices = @transform_1, window_bounds = array<i64: 4, 1>}, {pipeline_mode = #tpu.pipeline_mode<synchronous>, transform_indices = @transform_2, window_bounds = array<i64: 4, 1>}, {pipeline_mode = #tpu.pipeline_mode<synchronous>, transform_indices = @transform_3, window_bounds = array<i64: 4, 1>}, {pipeline_mode = #tpu.pipeline_mode<synchronous>, transform_indices = @transform_4, window_bounds = array<i64: 4, 1>}]} {
    %c0_i32 = arith.constant 0 : i32
    %0 = arith.cmpi eq, %arg0, %c0_i32 : i32
    %c0_i32_0 = arith.constant 0 : i32
    %1 = arith.cmpi eq, %arg1, %c0_i32_0 : i32
    %2 = arith.andi %0, %1 : i1
    %3 = arith.extui %2 : i1 to i32
    %c0_i32_1 = arith.constant 0 : i32
    %4 = arith.cmpi ne, %3, %c0_i32_1 : i32
    scf.if %4 {
      %c0_16 = arith.constant 0 : index
      %c0_17 = arith.constant 0 : index
      %c0_18 = arith.constant 0 : index
      %22 = vector.load %arg2[%c0_16, %c0_17, %c0_18] : memref<1x4x16xf32, #tpu.memory_space<vmem>>, vector<1x4x1xf32>
      %23 = vector.shape_cast %22 : vector<1x4x1xf32> to vector<4x1xf32>
      %c0_19 = arith.constant 0 : index
      %c0_20 = arith.constant 0 : index
      %24 = vector.load %arg9[%c0_19, %c0_20] : memref<4x1xf32, #tpu.memory_space<vmem>>, vector<4x1xf32>
      tpu.vector_store %arg9[%c0_19, %c0_20], %23 {strides = array<i32>} : memref<4x1xf32, #tpu.memory_space<vmem>>, vector<4x1xf32>,
      %cst = arith.constant 0.000000e+00 : f32
      %25 = vector.broadcast %cst : f32 to vector<4x16xf32>
      %c0_21 = arith.constant 0 : index
      %c0_22 = arith.constant 0 : index
      %26 = vector.load %arg7[%c0_21, %c0_22] : memref<4x16xf32, #tpu.memory_space<vmem>>, vector<4x16xf32>
      tpu.vector_store %arg7[%c0_21, %c0_22], %25 {strides = array<i32>} : memref<4x16xf32, #tpu.memory_space<vmem>>, vector<4x16xf32>,
      %cst_23 = arith.constant 0.000000e+00 : f32
      %27 = vector.broadcast %cst_23 : f32 to vector<4x16xf32>
      %c0_24 = arith.constant 0 : index
      %c0_25 = arith.constant 0 : index
      %28 = vector.load %arg8[%c0_24, %c0_25] : memref<4x16xf32, #tpu.memory_space<vmem>>, vector<4x16xf32>
      tpu.vector_store %arg8[%c0_24, %c0_25], %27 {strides = array<i32>} : memref<4x16xf32, #tpu.memory_space<vmem>>, vector<4x16xf32>,
    } else {
    }
    %c0 = arith.constant 0 : index
    %c0_2 = arith.constant 0 : index
    %c0_3 = arith.constant 0 : index
    %5 = vector.load %arg2[%c0, %c0_2, %c0_3] : memref<1x4x16xf32, #tpu.memory_space<vmem>>, vector<1x4x16xf32>
    %6 = vector.shape_cast %5 : vector<1x4x16xf32> to vector<4x16xf32>
    %c0_4 = arith.constant 0 : index
    %c0_5 = arith.constant 0 : index
    %7 = vector.load %arg9[%c0_4, %c0_5] : memref<4x1xf32, #tpu.memory_space<vmem>>, vector<4x1xf32>
    %8 = vector.broadcast %7 : vector<4x1xf32> to vector<4x16xf32>
    %9 = arith.subf %6, %8 : vector<4x16xf32>
    %c0_6 = arith.constant 0 : index
    %c0_7 = arith.constant 0 : index
    %10 = vector.load %arg7[%c0_6, %c0_7] : memref<4x16xf32, #tpu.memory_space<vmem>>, vector<4x16xf32>
    %11 = arith.addf %10, %9 : vector<4x16xf32>
    %c0_8 = arith.constant 0 : index
    %c0_9 = arith.constant 0 : index
    %12 = vector.load %arg7[%c0_8, %c0_9] : memref<4x16xf32, #tpu.memory_space<vmem>>, vector<4x16xf32>
    tpu.vector_store %arg7[%c0_8, %c0_9], %11 {strides = array<i32>} : memref<4x16xf32, #tpu.memory_space<vmem>>, vector<4x16xf32>,
    %c0_10 = arith.constant 0 : index
    %c0_11 = arith.constant 0 : index
    %13 = vector.load %arg8[%c0_10, %c0_11] : memref<4x16xf32, #tpu.memory_space<vmem>>, vector<4x16xf32>
    %14 = arith.mulf %9, %9 : vector<4x16xf32>
    %15 = arith.addf %13, %14 : vector<4x16xf32>
    %c0_12 = arith.constant 0 : index
    %c0_13 = arith.constant 0 : index
    %16 = vector.load %arg8[%c0_12, %c0_13] : memref<4x16xf32, #tpu.memory_space<vmem>>, vector<4x16xf32>
    tpu.vector_store %arg8[%c0_12, %c0_13], %15 {strides = array<i32>} : memref<4x16xf32, #tpu.memory_space<vmem>>, vector<4x16xf32>,
    %c1_i32 = arith.constant 1 : i32
    %17 = arith.cmpi eq, %arg0, %c1_i32 : i32
    %c0_i32_14 = arith.constant 0 : i32
    %18 = arith.cmpi eq, %arg1, %c0_i32_14 : i32
    %19 = arith.andi %17, %18 : i1
    %20 = arith.extui %19 : i1 to i32
    %c0_i32_15 = arith.constant 0 : i32
    %21 = arith.cmpi ne, %20, %c0_i32_15 : i32
    scf.if %21 {
      %c0_16 = arith.constant 0 : index
      %c0_17 = arith.constant 0 : index
      %22 = vector.load %arg9[%c0_16, %c0_17] : memref<4x1xf32, #tpu.memory_space<vmem>>, vector<4x1xf32>
      %c0_18 = arith.constant 0 : index
      %c0_19 = arith.constant 0 : index
      %23 = vector.load %arg7[%c0_18, %c0_19] : memref<4x16xf32, #tpu.memory_space<vmem>>, vector<4x16xf32>
      %cst = arith.constant dense<0.000000e+00> : vector<4xf32>
      %24 = vector.multi_reduction <add>, %23, %cst [1] : vector<4x16xf32> to vector<4xf32>
      %25 = vector.shape_cast %24 : vector<4xf32> to vector<4x1xf32>
      %cst_20 = arith.constant 0.000000e+00 : f32
      %26 = vector.broadcast %cst_20 : f32 to vector<4x1xf32>
      %27 = arith.mulf %26, %22 : vector<4x1xf32>
      %28 = arith.addf %25, %27 : vector<4x1xf32>
      %c0_21 = arith.constant 0 : index
      %c0_22 = arith.constant 0 : index
      %29 = vector.load %arg8[%c0_21, %c0_22] : memref<4x16xf32, #tpu.memory_space<vmem>>, vector<4x16xf32>
      %cst_23 = arith.constant dense<0.000000e+00> : vector<4xf32>
      %30 = vector.multi_reduction <add>, %29, %cst_23 [1] : vector<4x16xf32> to vector<4xf32>
      %31 = vector.shape_cast %30 : vector<4xf32> to vector<4x1xf32>
      %32 = arith.mulf %22, %22 : vector<4x1xf32>
      %cst_24 = arith.constant 0.000000e+00 : f32
      %33 = vector.broadcast %cst_24 : f32 to vector<4x1xf32>
      %34 = arith.mulf %33, %32 : vector<4x1xf32>
      %35 = arith.subf %31, %34 : vector<4x1xf32>
      %cst_25 = arith.constant 3.125000e-02 : f32
      %36 = vector.broadcast %cst_25 : f32 to vector<4x1xf32>
      %37 = arith.mulf %28, %36 : vector<4x1xf32>
      %cst_26 = arith.constant 3.125000e-02 : f32
      %38 = vector.broadcast %cst_26 : f32 to vector<4x1xf32>
      %39 = arith.mulf %35, %38 : vector<4x1xf32>
      %40 = arith.mulf %37, %37 : vector<4x1xf32>
      %41 = arith.subf %39, %40 : vector<4x1xf32>
      %42 = arith.addf %37, %22 : vector<4x1xf32>
      %cst_27 = arith.constant 9.99999974E-6 : f32
      %43 = vector.broadcast %cst_27 : f32 to vector<4x1xf32>
      %44 = arith.addf %41, %43 : vector<4x1xf32>
      %45 = math.rsqrt %44 : vector<4x1xf32>
      %c0_28 = arith.constant 0 : index
      %c0_29 = arith.constant 0 : index
      %46 = vector.load %arg3[%c0_28, %c0_29] : memref<4x1xf32, #tpu.memory_space<vmem>>, vector<4x1xf32>
      %47 = arith.mulf %45, %46 : vector<4x1xf32>
      %c0_30 = arith.constant 0 : index
      %c0_31 = arith.constant 0 : index
      %48 = vector.load %arg5[%c0_30, %c0_31] : memref<4x1xf32, #tpu.memory_space<vmem>>, vector<4x1xf32>
      tpu.vector_store %arg5[%c0_30, %c0_31], %47 {strides = array<i32>} : memref<4x1xf32, #tpu.memory_space<vmem>>, vector<4x1xf32>,
      %c0_32 = arith.constant 0 : index
      %c0_33 = arith.constant 0 : index
      %49 = vector.load %arg4[%c0_32, %c0_33] : memref<4x1xf32, #tpu.memory_space<vmem>>, vector<4x1xf32>
      %50 = arith.mulf %42, %47 : vector<4x1xf32>
      %51 = arith.subf %49, %50 : vector<4x1xf32>
      %c0_34 = arith.constant 0 : index
      %c0_35 = arith.constant 0 : index
      %52 = vector.load %arg6[%c0_34, %c0_35] : memref<4x1xf32, #tpu.memory_space<vmem>>, vector<4x1xf32>
      tpu.vector_store %arg6[%c0_34, %c0_35], %51 {strides = array<i32>} : memref<4x1xf32, #tpu.memory_space<vmem>>, vector<4x1xf32>,
    } else {
    }
    return
  }
  func.func @transform_0(%arg0: i32, %arg1: i32) -> (i32, i32, i32) {
    %c0_i32 = arith.constant 0 : i32
    %c0_i32_0 = arith.constant 0 : i32
    return %arg0, %c0_i32, %arg1 : i32, i32, i32
  }
  func.func @transform_1(%arg0: i32, %arg1: i32) -> (i32, i32) {
    %c0_i32 = arith.constant 0 : i32
    %c0_i32_0 = arith.constant 0 : i32
    %c0_i32_1 = arith.constant 0 : i32
    return %c0_i32, %c0_i32_0 : i32, i32
  }
  func.func @transform_2(%arg0: i32, %arg1: i32) -> (i32, i32) {
    %c0_i32 = arith.constant 0 : i32
    %c0_i32_0 = arith.constant 0 : i32
    %c0_i32_1 = arith.constant 0 : i32
    return %c0_i32, %c0_i32_0 : i32, i32
  }
  func.func @transform_3(%arg0: i32, %arg1: i32) -> (i32, i32) {
    %c0_i32 = arith.constant 0 : i32
    %c0_i32_0 = arith.constant 0 : i32
    %c0_i32_1 = arith.constant 0 : i32
    return %c0_i32, %c0_i32_0 : i32, i32
  }
  func.func @transform_4(%arg0: i32, %arg1: i32) -> (i32, i32) {
    %c0_i32 = arith.constant 0 : i32
    %c0_i32_0 = arith.constant 0 : i32
    %c0_i32_1 = arith.constant 0 : i32
    return %c0_i32, %c0_i32_0 : i32, i32
  }
}

</mosaic_0001>

<bundles_post_ra>
// kernel: tpu_custom_call.1
= control target key start
LH: loop header
LB: loop body
LE: loop exit
PB: predicated region body
PF: predicated region fallthrough
CT: control target
= control target key end

     0   :  { %s399_s15 = smov 0   ;;  %s401_s16 = smov 0   ;;  %s447_s0 = inlined_call_operand.vmem [shape: f32[2,4,16], index: 0, kind: input, shape index: {}]   ;;  %s448_s1 = inlined_call_operand.vmem [shape: f32[4,1], index: 1, kind: input, shape index: {}]   ;;  %s449_s2 = inlined_call_operand.vmem [shape: f32[4,1], index: 2, kind: input, shape index: {}]   ;;  %s450_s3 = inlined_call_operand.vmem [shape: f32[4,1], index: 3, kind: output, shape index: {0}]   ;;  %s451_s4 = inlined_call_operand.vmem [shape: f32[4,1], index: 4, kind: output, shape index: {1}]  }
   0x1   :  { %s403_s17 = smov 0  }
   0x2 LB: > { %s27_s18 = sadd.s32 1, %s366_s16  ;;  %p311_p0 = scmp.ge.s32.totalorder %s370_s17, 1  ;;  %s370_s17 = sphi %s403_s17, %s15_s17   ;;  %s366_s16 = sphi %s401_s16, %s453_s16   ;;  %s362_s15 = sphi %s399_s15, %s452_s15  }
   0x3   : > { %p29_p1 = scmp.ge.s32.totalorder %s27_s18, 2  ;;  %p171_p2 = scmp.lt.s32.totalorder %s370_s17, 3 }
   0x5   : > { %s455_s18 = smov (%p29_p1, %s27_s18), 0  ;;  %p172_p3 = pnand %p311_p0, %p171_p2 }
   0x6   : > { %p194_p4 = scmp.lt.s32.totalorder (!%p172_p3), %s362_s15, 1  ;;  %p201_p5 = scmp.eq.s32.totalorder (!%p172_p3), %s362_s15, 0 }
   0x7   : > { %175 = sbr.rel (%p172_p3) target bundleno = 340 (0x154), region = 32 }
   0xe   : > { %s195_s19 = scalar_select %p194_p4, %s362_s15, 1 }
   0xf   : > { %206 = sbr.rel (!%p201_p5) target bundleno = 22 (0x16), region = 36  ;;  %vm208_vm0 = vcmask (%p201_p5), 3072   ;;  %vm210_vm1 = vcmask (%p201_p5), 125952   ;;  %v372_v1 = vmov (%p201_p5), 0.0  }
  0x10   : > { %s312_s20 = sshll.u32 %s195_s19, 2  ;;  %211 = vst.msk [vmem:[#allocation2] sm:$0xf] (%p201_p5), %vm210_vm1, %v372_v1  ;;  %212 = vst.msk [vmem:[#allocation3] sm:$0xf] (%p201_p5), %vm210_vm1, %v372_v1 }
  0x11   : > { %s200_s23 = scalar_lea.vmem %s447_s0, %s312_s20 }
  0x12   : > { %v207_v0 = vld [vmem:[%s200_s23] sm:$0xf] (%p201_p5) }
  0x13   : > { %209 = vst.msk [vmem:[#allocation4] sm:$0xf] (%p201_p5), %vm208_vm0, %v207_v0 }
  0x16 PF: > { %v373_v3 = vmov 0   ;;  %p229_p6 = scmp.eq.s32.totalorder %s362_s15, 1  ;;  %v213_v4 = vld [vmem:[%s200_s23] sm:$0xf]  ;;  %vm223_vm2 = vcmask 125952  }
  0x17   : > { %345 = vset.pattern.permute.xlu0 %v373_v3  ;;  %v221_v5 = vld [vmem:[#allocation2] sm:$0xf]  ;;  %v225_v8 = vld [vmem:[#allocation3] sm:$0xf]  ;;  %vm257_vm3 = vcmask (%p229_p6), 3072  }
  0x18   : > { %v255_v29 = vld [vmem:[%s448_s1] sm:$0xf] (%p229_p6) }
  0x19   : > { %v259_v33 = vld [vmem:[%s449_s2] sm:$0xf] (%p229_p6) }
  0x1a   : > { %v214_v2 = vld [vmem:[#allocation4] sm:$0xf] }
  0x1b   : > { %217 = vperm.xlu0 %345, %v214_v2   ;;  %v234_v16 = vld [vmem:[#allocation4] sm:$0xf] (%p229_p6) }
  0x1c   : > { %v239_v17 = vmul.f32 (%p229_p6), 0.0, %v234_v16  ;;  %v245_v18 = vmul.f32 (%p229_p6), %v234_v16, %v234_v16 }
  0x1e   : > { %v246_v21 = vmul.f32 (%p229_p6), 0.0, %v245_v18 }
  0x9a   : > { %v218_v6 = vpop.permute.xlu0 %217 }
  0x9b   : > { %v220_v7 = vsub.f32 %v213_v4, %v218_v6  ;;  %233 = sbr.rel (!%p229_p6) target bundleno = 340 (0x154), region = 40 }
  0x9d   : > { %v222_v9 = vadd.f32 %v221_v5, %v220_v7  ;;  %v226_v10 = vmul.f32 %v220_v7, %v220_v7 }
  0x9f   : > { %224 = vst.msk [vmem:[#allocation2] sm:$0xf] %vm223_vm2, %v222_v9  ;;  %v227_v11 = vadd.f32 %v226_v10, %v225_v8 }
  0xa1   : > { %228 = vst.msk [vmem:[#allocation3] sm:$0xf] %vm223_vm2, %v227_v11 }
  0xa6   : > { %v235_v12 = vld [vmem:[#allocation2] sm:$0xf] }
  0xa7   : > { %v236_v14 = vsel %vm223_vm2, %v235_v12, 0.0 }
  0xa8   : > { %v241_v13 = vld [vmem:[#allocation3] sm:$0xf]  ;;  %237 = vadd.xlane.f32.xlu0 %v236_v14 }
  0xa9   : > { %v242_v15 = vsel %vm223_vm2, %v241_v13, 0.0 }
  0xac   : > { %243 = vadd.xlane.f32.xlu0 %v242_v15 }
 0x135   : > { %v238_v19 = vpop.xlane.xlu0 %237 }
 0x136   : > { %v240_v20 = vadd.f32 %v239_v17, %v238_v19 }
 0x138   : > { %v248_v22 = vmul.f32 0.03125, %v240_v20 }
 0x139   : > { %v244_v23 = vpop.xlane.xlu0 %243 }
 0x13a   : > { %v247_v24 = vsub.f32 %v244_v23, %v246_v21  ;;  %v250_v25 = vmul.f32 %v248_v22, %v248_v22  ;;  %v252_v31 = vadd.f32 %v248_v22, %v234_v16 }
 0x13c   : > { %v249_v26 = vmul.f32 0.03125, %v247_v24 }
 0x13e   : > { %v251_v27 = vsub.f32 %v249_v26, %v250_v25 }
 0x140   : > { %v253_v28 = vadd.f32 1e-05, %v251_v27 }
 0x142   : > { %346 = vrsqrt.f32 %v253_v28 }
 0x14c   : > { %v347_v30 = vpop.eup %346 }
 0x14d   : > { %v256_v32 = vmul.f32 %v347_v30, %v255_v29 }
 0x14f   : > { %258 = vst.msk [vmem:[%s450_s3] sm:$0xf] %vm257_vm3, %v256_v32  ;;  %v260_v34 = vmul.f32 %v256_v32, %v252_v31 }
 0x151   : > { %v261_v35 = vsub.f32 %v259_v33, %v260_v34 }
 0x153   : > { %262 = vst.msk [vmem:[%s451_s4] sm:$0xf] %vm257_vm3, %v261_v35 }
 0x154 PF: > { %s15_s17 = sadd.s32 1, %s370_s17   ;;  %s452_s15 = smov %s366_s16 }
 0x155   : > { %p12_p7 = scmp.ge.s32.totalorder %s15_s17, 4   ;;  %s453_s16 = smov %s455_s18 }
 0x157   :  { %14 = sbr.rel (!%p12_p7) target bundleno = 2 (0x2), region = 74 }

</bundles_post_ra>
